<compile_context>
chip_gen: v5e
topology: v5e:2x2
jax: 0.10.0
libtpu: 0.0.40
codegen_flags: <defaults>
</compile_context>

<pallas_src>
import functools

import jax
import jax.numpy as jnp
from jax.experimental import pallas as pl
from jax.experimental.pallas import tpu as pltpu

_LANES = 1024        # lane-dense slab width (multiple of 128 -> unmasked vst)
_BLOCK_ROWS = 512    # 512 x 1024 f32 = 2 MiB per operand block; fits every
                     # generation's scoped-VMEM default with double buffering.


def _dropout_prng_kernel(seed_ref, x_ref, o_ref, *, threshold, inv_keep):
    # Decorrelate the PRNG stream per grid step (and per TensorCore when the
    # "parallel" axis is sharded across v7x's two cores).
    pltpu.prng_seed(seed_ref[0] + pl.program_id(0))
    bits = pltpu.bitcast(pltpu.prng_random_bits(x_ref.shape), jnp.uint32)
    keep = bits < jnp.uint32(threshold)            # keep iff u32 < keep_prob * 2^32
    o_ref[...] = jnp.where(keep, x_ref[...] * inv_keep, 0.0)


def _dropout_bits_kernel(x_ref, bits_ref, o_ref, *, threshold, inv_keep):
    # Portable variant: random bits are precomputed in the wrapper.
    keep = bits_ref[...] < jnp.uint32(threshold)
    o_ref[...] = jnp.where(keep, x_ref[...] * inv_keep, 0.0)


def custom_dropout(x, rate, seed, training=True):
    """Pallas implementation of CustomDropout.forward.

    x: float32 array of any shape (NCHW for conv-style inputs).
    rate: python float dropout rate.
    seed: int scalar seed (RNG stream differs from PyTorch, semantics match).
    """
    if not training:
        return x

    rate = float(rate)
    keep_prob = 1.0 - rate
    inv_keep = 1.0 / keep_prob
    # Integer threshold compare: keep iff uniform uint32 bits < keep_prob * 2^32.
    threshold = min(int(keep_prob * 2.0 ** 32), 2 ** 32 - 1)

    orig_shape = x.shape
    orig_dtype = x.dtype
    total = x.size

    rows = pl.cdiv(total, _LANES)
    tr = min(_BLOCK_ROWS, rows)            # block rows (== full rows for small inputs)
    grid_rows = pl.cdiv(rows, tr)
    padded_rows = grid_rows * tr
    padded_total = padded_rows * _LANES

    x_flat = x.reshape(-1).astype(jnp.float32)
    if padded_total != total:
        x_flat = jnp.pad(x_flat, (0, padded_total - total))
    x2d = x_flat.reshape(padded_rows, _LANES)

    block = (tr, _LANES)
    out_shape = jax.ShapeDtypeStruct((padded_rows, _LANES), jnp.float32)

    if jax.default_backend() == "tpu":
        seed_arr = jnp.asarray([seed], dtype=jnp.int32)
        kernel = functools.partial(
            _dropout_prng_kernel, threshold=threshold, inv_keep=inv_keep)
        out2d = pl.pallas_call(
            kernel,
            out_shape=out_shape,
            grid_spec=pltpu.PrefetchScalarGridSpec(
                num_scalar_prefetch=1,
                grid=(grid_rows,),
                in_specs=[pl.BlockSpec(block, lambda i, seed: (i, 0))],
                out_specs=pl.BlockSpec(block, lambda i, seed: (i, 0)),
            ),
            compiler_params=pltpu.CompilerParams(
                dimension_semantics=("parallel",),
            ),
        )(seed_arr, x2d)
    else:
        # Non-TPU backend (e.g. CPU interpreter): TPU PRNG primitives don't
        # lower here, so generate the uniform bits outside the kernel.
        bits = jax.random.bits(
            jax.random.PRNGKey(seed), (padded_rows, _LANES), dtype=jnp.uint32)
        kernel = functools.partial(
            _dropout_bits_kernel, threshold=threshold, inv_keep=inv_keep)
        out2d = pl.pallas_call(
            kernel,
            out_shape=out_shape,
            grid=(grid_rows,),
            in_specs=[
                pl.BlockSpec(block, lambda i: (i, 0)),
                pl.BlockSpec(block, lambda i: (i, 0)),
            ],
            out_specs=pl.BlockSpec(block, lambda i: (i, 0)),
            compiler_params=pltpu.CompilerParams(
                dimension_semantics=("parallel",),
            ),
        )(x2d, bits)

    return out2d.reshape(-1)[:total].reshape(orig_shape).astype(orig_dtype)


if __name__ == "__main__":
    key = jax.random.PRNGKey(0)
    # Small NCHW input consistent with a conv-style pipeline.
    x = jax.random.normal(key, (2, 4, 16, 16), dtype=jnp.float32)

    rate = 0.3
    out = custom_dropout(x, rate=rate, seed=42, training=True)
    out = jax.block_until_ready(out)

    # Sanity checks: same shape/dtype; surviving elements are scaled by
    # 1/(1-rate), dropped elements are exactly zero.
    assert out.shape == x.shape and out.dtype == x.dtype
    scaled = x / (1.0 - rate)
    is_zero = jnp.isclose(out, 0.0)
    is_scaled = jnp.isclose(out, scaled, rtol=1e-5, atol=1e-6)
    assert bool(jnp.all(is_zero | is_scaled))
    # Eval mode is identity.
    assert bool(jnp.all(custom_dropout(x, rate, 42, training=False) == x))

    print("KERNEL_OK")
</pallas_src>

<mosaic_0001>
module attributes {stable_mosaic.version = 11 : i64} {
  func.func @_dropout_bits_kernel(%arg0: i32, %arg1: memref<2x1024xf32, #tpu.memory_space<vmem>>, %arg2: memref<2x1024xi32, #tpu.memory_space<vmem>>, %arg3: memref<2x1024xf32, #tpu.memory_space<vmem>>) attributes {dimension_semantics = [#tpu.dimension_semantics<parallel>], iteration_bounds = array<i64: 1>, scalar_prefetch = 0 : i64, scratch_operands = 0 : i64, tpu.core_type = #tpu.core_type<tc>, window_params = [{transform_indices = @transform_0, window_bounds = array<i64: 2, 1024>}, {transform_indices = @transform_1, window_bounds = array<i64: 2, 1024>}, {transform_indices = @transform_2, window_bounds = array<i64: 2, 1024>}]} {
    %c0 = arith.constant 0 : index
    %c0_0 = arith.constant 0 : index
    %0 = vector.load %arg2[%c0, %c0_0] : memref<2x1024xi32, #tpu.memory_space<vmem>>, vector<2x1024xi32>
    %c-1288490189_i32 = arith.constant -1288490189 : i32
    %1 = vector.broadcast %c-1288490189_i32 : i32 to vector<2x1024xi32>
    %2 = arith.cmpi ult, %0, %1 : vector<2x1024xi32>
    %c0_1 = arith.constant 0 : index
    %c0_2 = arith.constant 0 : index
    %3 = vector.load %arg1[%c0_1, %c0_2] : memref<2x1024xf32, #tpu.memory_space<vmem>>, vector<2x1024xf32>
    %cst = arith.constant 1.42857146 : f32
    %4 = vector.broadcast %cst : f32 to vector<2x1024xf32>
    %5 = arith.mulf %3, %4 : vector<2x1024xf32>
    %cst_3 = arith.constant 0.000000e+00 : f32
    %6 = vector.broadcast %cst_3 : f32 to vector<2x1024xf32>
    %7 = arith.select %2, %5, %6 : vector<2x1024xi1>, vector<2x1024xf32>
    %c0_4 = arith.constant 0 : index
    %c0_5 = arith.constant 0 : index
    %8 = vector.load %arg3[%c0_4, %c0_5] : memref<2x1024xf32, #tpu.memory_space<vmem>>, vector<2x1024xf32>
    tpu.vector_store %arg3[%c0_4, %c0_5], %7 {strides = array<i32>} : memref<2x1024xf32, #tpu.memory_space<vmem>>, vector<2x1024xf32>,
    return
  }
  func.func @transform_0(%arg0: i32) -> (i32, i32) {
    %c0_i32 = arith.constant 0 : i32
    %c0_i32_0 = arith.constant 0 : i32
    return %arg0, %c0_i32 : i32, i32
  }
  func.func @transform_1(%arg0: i32) -> (i32, i32) {
    %c0_i32 = arith.constant 0 : i32
    %c0_i32_0 = arith.constant 0 : i32
    return %arg0, %c0_i32 : i32, i32
  }
  func.func @transform_2(%arg0: i32) -> (i32, i32) {
    %c0_i32 = arith.constant 0 : i32
    %c0_i32_0 = arith.constant 0 : i32
    return %arg0, %c0_i32 : i32, i32
  }
}

</mosaic_0001>

<bundles_post_ra>
// kernel: tpu_custom_call.1
= control target key start
LH: loop header
LB: loop body
LE: loop exit
PB: predicated region body
PF: predicated region fallthrough
CT: control target
= control target key end

     0   :  { %7 = vsyncpa [#allocation3], 0  ;;  %s184_s0 = inlined_call_operand.hbm [shape: f32[2,1024], index: 0, kind: input, shape index: {}]   ;;  %s185_s1 = inlined_call_operand.hbm [shape: u32[2,1024], index: 1, kind: input, shape index: {}]   ;;  %s186_s2 = inlined_call_operand.hbm [shape: f32[2,1024], index: 2, kind: output, shape index: {}]  }
   0x1   :  { %8 = vsyncpa [#allocation6], 0 }
   0x2   :  { %9 = vsyncpa [#allocation4], 0  ;;  %s15_s11 = sshll.u32 %s184_s0, 4  ;;  %s157_s12 = smov [#allocation2]   ;;  %s16_s11 = int_to_ptr.hbm [resolvable:$true] %s15_s11 }
   0x3   :  { %s17_s13 = sshll.u32 %s157_s12, 4  ;;  %s26_s16 = sshll.u32 %s185_s1, 4  ;;  %s18_s13 = int_to_ptr.vmem [resolvable:$true] %s17_s13  ;;  %s27_s16 = int_to_ptr.hbm [resolvable:$true] %s26_s16 }
   0x4   :  { %20 = dma.hbm_to_vmem [thread:$0]  %s16_s11, 256, %s18_s13, [#allocation3]  }
   0x5   :  { %s158_s17 = smov [#allocation5]  }
   0x6   :  { %s28_s18 = sshll.u32 %s158_s17, 4  ;;  %s29_s18 = int_to_ptr.vmem [resolvable:$true] %s28_s18 }
   0x7   :  { %31 = dma.hbm_to_vmem [thread:$0]  %s27_s16, 256, %s29_s18, [#allocation6]  }
   0x8   :  { %151 = dma.done.wait [#allocation3], 256  }
   0x9   :  { %152 = vsyncadd [#allocation3], 4294967040 }
   0xa   :  { %153 = dma.done.wait [#allocation6], 256  }
   0xb   :  { %154 = vsyncadd [#allocation6], 4294967040  ;;  %v40_v0 = vld [vmem:[#allocation5] sm:$0xff]  ;;  %v48_v1 = vld [vmem:[#allocation2] sm:$0xff]  ;;  %s63_s20 = sshll.u32 %s186_s2, 4  ;;  %s159_s1 = smov [#allocation7]   ;;  %s64_s20 = int_to_ptr.hbm [resolvable:$true] %s63_s20 }
   0xc   :  { %v41_v2 = vld [vmem:[#allocation5 + $0x8] sm:$0xff]  ;;  %v74_v3 = vxor.u32 2147483648, %v40_v0  ;;  %v50_v4 = vmul.f32 1.4285715, %v48_v1  ;;  %v49_v6 = vld [vmem:[#allocation2 + $0x8] sm:$0xff]  ;;  %s61_s21 = sshll.u32 %s159_s1, 4  ;;  %s62_s21 = int_to_ptr.vmem [resolvable:$true] %s61_s21 }
   0xd   :  { %v75_v5 = vxor.u32 2147483648, %v41_v2  ;;  %v51_v7 = vmul.f32 1.4285715, %v49_v6 }
   0xe   :  { %vm44_vm0 = vcmp.lt.s32.totalorder %v74_v3, 858993459 }
   0xf   :  { %vm47_vm1 = vcmp.lt.s32.totalorder %v75_v5, 858993459  ;;  %v52_v8 = vsel %vm44_vm0, %v50_v4, 0.0 }
  0x10   :  { %v53_v9 = vsel %vm47_vm1, %v51_v7, 0.0  ;;  %54 = vst [vmem:[#allocation7] sm:$0xff] %v52_v8 }
  0x11   :  { %55 = vst [vmem:[#allocation7 + $0x8] sm:$0xff] %v53_v9 }
  0x12   :  { %66 = dma.vmem_to_hbm [thread:$0]  %s62_s21, 256, %s64_s20, [#allocation4]  }
  0x13   :  { %155 = dma.done.wait [#allocation4], 256  }
  0x14   :  { %156 = vsyncadd [#allocation4], 4294967040 }
  0x15   :  { %71 = vsyncpa [#allocation3], 1 }
  0x16   :  { %72 = vsyncpa [#allocation6], 1 }
  0x17   :  { %73 = vsyncpa [#allocation4], 1 }

</bundles_post_ra>
